<compile_context>
chip_gen: v5e
topology: v5e:2x2
jax: 0.10.0
libtpu: 0.0.40
codegen_flags: <defaults>
</compile_context>

<pallas_src>
import functools
import math

import jax
import jax.numpy as jnp
from jax.experimental import pallas as pl
from jax.experimental.pallas import tpu as pltpu


def _round_up(x, m):
    return ((x + m - 1) // m) * m


def _default_epilogue_dtype():
    """bf16 elementwise epilogue on chips with a bf16 VPU (v6e/v7x), f32 on
    older generations (v5e and earlier have no native bf16 VPU/EUP)."""
    try:
        kind = jax.devices()[0].device_kind.lower()
    except Exception:
        return jnp.bfloat16
    for old in ("v2", "v3", "v4", "v5 lite", "v5e", "v5p"):
        if old in kind:
            return jnp.float32
    return jnp.bfloat16


def _actor_kernel(max_actions, action_dim, epilogue_dtype,
                  s_ref, w1_ref, b1_ref, w2_ref, b2_ref, w3_ref, b3_ref,
                  o_ref):
    wdt = w1_ref.dtype                                     # bf16 (MXU dtype)
    x = s_ref[...].astype(wdt)                             # [TB, S]

    # Layer 1: Linear(S -> 512 padded) + ReLU (padded cols are exactly zero).
    h1 = jnp.dot(x, w1_ref[...], preferred_element_type=jnp.float32)
    h1 = jnp.maximum(h1.astype(epilogue_dtype) + b1_ref[...].astype(epilogue_dtype),
                     0).astype(wdt)                        # [TB, 512]

    # Layer 2: Linear(512 -> 384 padded) + ReLU.
    h2 = jnp.dot(h1, w2_ref[...], preferred_element_type=jnp.float32)
    h2 = jnp.maximum(h2.astype(epilogue_dtype) + b2_ref[...].astype(epilogue_dtype),
                     0).astype(wdt)                        # [TB, 384]

    # Layer 3: Linear(384 -> 128 padded).  Only the real action columns get the
    # bias / tanh / store (narrow lane-masked store, no 128-lane amplification).
    h3 = jnp.dot(h2, w3_ref[...], preferred_element_type=jnp.float32)  # [TB,128]
    z = h3[:, :action_dim] + b3_ref[...][:, :action_dim]               # [TB,A] f32
    o_ref[...] = (max_actions * jnp.tanh(z)).astype(o_ref.dtype)


def actor_forward(state, params, max_actions, action_dim, block_b=2048,
                  epilogue_dtype=None):
    """state: [B, state_dim] f32. params: padded dict of w1,b1,w2,b2,w3,b3."""
    if epilogue_dtype is None:
        epilogue_dtype = _default_epilogue_dtype()

    w1, b1 = params["w1"], params["b1"]
    w2, b2 = params["w2"], params["b2"]
    w3, b3 = params["w3"], params["b3"]

    B, S = state.shape
    H1P, H2P, AP = w1.shape[1], w2.shape[1], w3.shape[1]

    # --- adaptive batch tiling ---------------------------------------------
    # Choose the number of grid steps from B so padding waste is at most one
    # sublane-row per step; force >= 2 (even) steps when there is enough work
    # so v7x megacore gets both TensorCores busy.
    B8 = _round_up(B, 8)
    n_steps = pl.cdiv(B8, block_b)
    if B8 >= 16:
        n_steps = max(n_steps, 2)
    if n_steps > 1 and n_steps % 2:
        n_steps += 1                      # balanced split across 2 TCs on v7x
    TB = _round_up(pl.cdiv(B8, n_steps), 8)
    B_pad = TB * n_steps
    if B_pad != B:
        state = jnp.pad(state, ((0, B_pad - B), (0, 0)))
    grid = (n_steps,)

    pinned = lambda arr: pl.BlockSpec(arr.shape, lambda i: (0, 0))
    kernel = functools.partial(_actor_kernel, max_actions, action_dim,
                               epilogue_dtype)

    bytes_per = lambda a: a.size * a.dtype.itemsize
    cost = pl.CostEstimate(
        flops=2 * B_pad * (S * H1P + H1P * H2P + H2P * AP),
        transcendentals=B_pad * action_dim,
        bytes_accessed=(B_pad * S * 4 + B_pad * action_dim * 4
                        + sum(bytes_per(a) for a in (w1, b1, w2, b2, w3, b3))),
    )

    out = pl.pallas_call(
        kernel,
        out_shape=jax.ShapeDtypeStruct((B_pad, action_dim), jnp.float32),
        grid=grid,
        in_specs=[
            pl.BlockSpec((TB, S), lambda i: (i, 0)),   # state: tiled over batch
            pinned(w1), pinned(b1),                    # weights/biases resident
            pinned(w2), pinned(b2),
            pinned(w3), pinned(b3),
        ],
        # Narrow output: last dim equals the full array dim -> legal block.
        out_specs=pl.BlockSpec((TB, action_dim), lambda i: (i, 0)),
        compiler_params=pltpu.CompilerParams(
            dimension_semantics=("parallel",)),
        cost_estimate=cost,
    )(state, w1, b1, w2, b2, w3, b3)

    return out if B_pad == B else out[:B]


def init_actor_params(key, state_dim, action_dim, weight_dtype=jnp.bfloat16):
    """Init mimicking PyTorch nn.Linear default
    (uniform(-1/sqrt(fan_in), 1/sqrt(fan_in))), zero-padded to lane multiples:
    400->512, 300->384, action_dim->round_up(action_dim, 128).

    Returns (padded_params, raw_params).  Zero padding does not change the
    math: padded hidden columns get 0 bias and 0 weights -> ReLU(0)=0, and the
    corresponding padded weight rows of the next layer are 0."""
    dims = [(state_dim, 400), (400, 300), (300, action_dim)]
    padded_in = [state_dim, 512, 384]
    padded_out = [512, 384, _round_up(action_dim, 128)]

    params, raw = {}, {}
    for i, ((fin, fout), pin, pout) in enumerate(
            zip(dims, padded_in, padded_out), start=1):
        key, kw, kb = jax.random.split(key, 3)
        bound = 1.0 / math.sqrt(fin)
        # Stored already transposed: [in_features, out_features].
        w = jax.random.uniform(kw, (fin, fout), jnp.float32,
                               minval=-bound, maxval=bound).astype(weight_dtype)
        # Bias kept 2D [1, fout] f32 for clean lane broadcast.
        b = jax.random.uniform(kb, (1, fout), jnp.float32,
                               minval=-bound, maxval=bound)
        raw[f"w{i}"], raw[f"b{i}"] = w, b
        params[f"w{i}"] = jnp.zeros((pin, pout), weight_dtype).at[:fin, :fout].set(w)
        params[f"b{i}"] = jnp.zeros((1, pout), jnp.float32).at[:, :fout].set(b)
    return params, raw


def _ref_forward(state, raw, max_actions, epilogue_dtype):
    """Pure-JAX reference following the same numeric path as the kernel
    (bf16 MXU operands, f32 accumulation, epilogue_dtype bias/ReLU)."""
    wdt = raw["w1"].dtype
    h = jnp.dot(state.astype(wdt), raw["w1"], preferred_element_type=jnp.float32)
    h = jnp.maximum(h.astype(epilogue_dtype) + raw["b1"].astype(epilogue_dtype),
                    0).astype(wdt)
    h = jnp.dot(h, raw["w2"], preferred_element_type=jnp.float32)
    h = jnp.maximum(h.astype(epilogue_dtype) + raw["b2"].astype(epilogue_dtype),
                    0).astype(wdt)
    h = jnp.dot(h, raw["w3"], preferred_element_type=jnp.float32)
    h = h + raw["b3"]
    return max_actions * jnp.tanh(h)


if __name__ == "__main__":
    batch = 2
    state_dim = 8
    action_dim = 4
    max_actions = 2.0

    key = jax.random.PRNGKey(0)
    key, k_state = jax.random.split(key)
    state = jax.random.normal(k_state, (batch, state_dim), dtype=jnp.float32)

    params, raw = init_actor_params(key, state_dim, action_dim)

    epi = _default_epilogue_dtype()
    out = actor_forward(state, params, max_actions, action_dim,
                        epilogue_dtype=epi)
    out = jax.block_until_ready(out)

    ref = _ref_forward(state, raw, max_actions, epi)
    assert out.shape == (batch, action_dim)
    assert jnp.allclose(out, ref, atol=2e-3, rtol=2e-3), (out, ref)

    print("KERNEL_OK")
</pallas_src>

<mosaic_0001>
module attributes {stable_mosaic.version = 11 : i64} {
  func.func @_actor_kernel(%arg0: i32, %arg1: memref<8x8xf32, #tpu.memory_space<vmem>>, %arg2: memref<8x512xbf16, #tpu.memory_space<vmem>>, %arg3: memref<1x512xf32, #tpu.memory_space<vmem>>, %arg4: memref<512x384xbf16, #tpu.memory_space<vmem>>, %arg5: memref<1x384xf32, #tpu.memory_space<vmem>>, %arg6: memref<384x128xbf16, #tpu.memory_space<vmem>>, %arg7: memref<1x128xf32, #tpu.memory_space<vmem>>, %arg8: memref<8x4xf32, #tpu.memory_space<vmem>>) attributes {dimension_semantics = [#tpu.dimension_semantics<parallel>], iteration_bounds = array<i64: 1>, scalar_prefetch = 0 : i64, scratch_operands = 0 : i64, tpu.core_type = #tpu.core_type<tc>, window_params = [{transform_indices = @transform_0, window_bounds = array<i64: 8, 8>}, {pipeline_mode = #tpu.pipeline_mode<synchronous>, transform_indices = @transform_1, window_bounds = array<i64: 8, 512>}, {pipeline_mode = #tpu.pipeline_mode<synchronous>, transform_indices = @transform_2, window_bounds = array<i64: 1, 512>}, {pipeline_mode = #tpu.pipeline_mode<synchronous>, transform_indices = @transform_3, window_bounds = array<i64: 512, 384>}, {pipeline_mode = #tpu.pipeline_mode<synchronous>, transform_indices = @transform_4, window_bounds = array<i64: 1, 384>}, {pipeline_mode = #tpu.pipeline_mode<synchronous>, transform_indices = @transform_5, window_bounds = array<i64: 384, 128>}, {pipeline_mode = #tpu.pipeline_mode<synchronous>, transform_indices = @transform_6, window_bounds = array<i64: 1, 128>}, {transform_indices = @transform_7, window_bounds = array<i64: 8, 4>}]} {
    %c0 = arith.constant 0 : index
    %c0_0 = arith.constant 0 : index
    %0 = vector.load %arg1[%c0, %c0_0] : memref<8x8xf32, #tpu.memory_space<vmem>>, vector<8x8xf32>
    %1 = arith.truncf %0 : vector<8x8xf32> to vector<8x8xbf16>
    %c0_1 = arith.constant 0 : index
    %c0_2 = arith.constant 0 : index
    %2 = vector.load %arg2[%c0_1, %c0_2] : memref<8x512xbf16, #tpu.memory_space<vmem>>, vector<8x512xbf16>
    %cst = arith.constant dense<0.000000e+00> : vector<8x512xf32>
    %3 = tpu.matmul %1, %2, %cst {dimension_numbers = #tpu.dot_dimension_numbers<[1], [0], [0], [1], [0, 0, 1, 1], [], []>} : vector<8x8xbf16>, vector<8x512xbf16>, vector<8x512xf32> -> vector<8x512xf32>
    %4 = arith.truncf %3 : vector<8x512xf32> to vector<8x512xbf16>
    %c0_3 = arith.constant 0 : index
    %c0_4 = arith.constant 0 : index
    %5 = vector.load %arg3[%c0_3, %c0_4] : memref<1x512xf32, #tpu.memory_space<vmem>>, vector<1x512xf32>
    %6 = arith.truncf %5 : vector<1x512xf32> to vector<1x512xbf16>
    %7 = vector.broadcast %6 : vector<1x512xbf16> to vector<8x512xbf16>
    %8 = arith.addf %4, %7 : vector<8x512xbf16>
    %cst_5 = arith.constant 0.000000e+00 : bf16
    %9 = vector.broadcast %cst_5 : bf16 to vector<8x512xbf16>
    %10 = arith.maximumf %8, %9 : vector<8x512xbf16>
    %c0_6 = arith.constant 0 : index
    %c0_7 = arith.constant 0 : index
    %11 = vector.load %arg4[%c0_6, %c0_7] : memref<512x384xbf16, #tpu.memory_space<vmem>>, vector<512x384xbf16>
    %cst_8 = arith.constant dense<0.000000e+00> : vector<8x384xf32>
    %12 = tpu.matmul %10, %11, %cst_8 {dimension_numbers = #tpu.dot_dimension_numbers<[1], [0], [0], [1], [0, 0, 1, 1], [], []>} : vector<8x512xbf16>, vector<512x384xbf16>, vector<8x384xf32> -> vector<8x384xf32>
    %13 = arith.truncf %12 : vector<8x384xf32> to vector<8x384xbf16>
    %c0_9 = arith.constant 0 : index
    %c0_10 = arith.constant 0 : index
    %14 = vector.load %arg5[%c0_9, %c0_10] : memref<1x384xf32, #tpu.memory_space<vmem>>, vector<1x384xf32>
    %15 = arith.truncf %14 : vector<1x384xf32> to vector<1x384xbf16>
    %16 = vector.broadcast %15 : vector<1x384xbf16> to vector<8x384xbf16>
    %17 = arith.addf %13, %16 : vector<8x384xbf16>
    %cst_11 = arith.constant 0.000000e+00 : bf16
    %18 = vector.broadcast %cst_11 : bf16 to vector<8x384xbf16>
    %19 = arith.maximumf %17, %18 : vector<8x384xbf16>
    %c0_12 = arith.constant 0 : index
    %c0_13 = arith.constant 0 : index
    %20 = vector.load %arg6[%c0_12, %c0_13] : memref<384x128xbf16, #tpu.memory_space<vmem>>, vector<384x128xbf16>
    %cst_14 = arith.constant dense<0.000000e+00> : vector<8x128xf32>
    %21 = tpu.matmul %19, %20, %cst_14 {dimension_numbers = #tpu.dot_dimension_numbers<[1], [0], [0], [1], [0, 0, 1, 1], [], []>} : vector<8x384xbf16>, vector<384x128xbf16>, vector<8x128xf32> -> vector<8x128xf32>
    %22 = vector.extract_strided_slice %21 {offsets = [0, 0], sizes = [8, 4], strides = [1, 1]} : vector<8x128xf32> to vector<8x4xf32>
    %c0_15 = arith.constant 0 : index
    %c0_16 = arith.constant 0 : index
    %23 = vector.load %arg7[%c0_15, %c0_16] : memref<1x128xf32, #tpu.memory_space<vmem>>, vector<1x128xf32>
    %24 = vector.extract_strided_slice %23 {offsets = [0, 0], sizes = [1, 4], strides = [1, 1]} : vector<1x128xf32> to vector<1x4xf32>
    %25 = vector.broadcast %24 : vector<1x4xf32> to vector<8x4xf32>
    %26 = arith.addf %22, %25 : vector<8x4xf32>
    %27 = math.tanh %26 : vector<8x4xf32>
    %cst_17 = arith.constant 2.000000e+00 : f32
    %28 = vector.broadcast %cst_17 : f32 to vector<8x4xf32>
    %29 = arith.mulf %28, %27 : vector<8x4xf32>
    %c0_18 = arith.constant 0 : index
    %c0_19 = arith.constant 0 : index
    %30 = vector.load %arg8[%c0_18, %c0_19] : memref<8x4xf32, #tpu.memory_space<vmem>>, vector<8x4xf32>
    tpu.vector_store %arg8[%c0_18, %c0_19], %29 {strides = array<i32>} : memref<8x4xf32, #tpu.memory_space<vmem>>, vector<8x4xf32>,
    return
  }
  func.func @transform_0(%arg0: i32) -> (i32, i32) {
    %c0_i32 = arith.constant 0 : i32
    %c0_i32_0 = arith.constant 0 : i32
    return %arg0, %c0_i32 : i32, i32
  }
  func.func @transform_1(%arg0: i32) -> (i32, i32) {
    %c0_i32 = arith.constant 0 : i32
    %c0_i32_0 = arith.constant 0 : i32
    %c0_i32_1 = arith.constant 0 : i32
    return %c0_i32, %c0_i32_0 : i32, i32
  }
  func.func @transform_2(%arg0: i32) -> (i32, i32) {
    %c0_i32 = arith.constant 0 : i32
    %c0_i32_0 = arith.constant 0 : i32
    %c0_i32_1 = arith.constant 0 : i32
    return %c0_i32, %c0_i32_0 : i32, i32
  }
  func.func @transform_3(%arg0: i32) -> (i32, i32) {
    %c0_i32 = arith.constant 0 : i32
    %c0_i32_0 = arith.constant 0 : i32
    %c0_i32_1 = arith.constant 0 : i32
    return %c0_i32, %c0_i32_0 : i32, i32
  }
  func.func @transform_4(%arg0: i32) -> (i32, i32) {
    %c0_i32 = arith.constant 0 : i32
    %c0_i32_0 = arith.constant 0 : i32
    %c0_i32_1 = arith.constant 0 : i32
    return %c0_i32, %c0_i32_0 : i32, i32
  }
  func.func @transform_5(%arg0: i32) -> (i32, i32) {
    %c0_i32 = arith.constant 0 : i32
    %c0_i32_0 = arith.constant 0 : i32
    %c0_i32_1 = arith.constant 0 : i32
    return %c0_i32, %c0_i32_0 : i32, i32
  }
  func.func @transform_6(%arg0: i32) -> (i32, i32) {
    %c0_i32 = arith.constant 0 : i32
    %c0_i32_0 = arith.constant 0 : i32
    %c0_i32_1 = arith.constant 0 : i32
    return %c0_i32, %c0_i32_0 : i32, i32
  }
  func.func @transform_7(%arg0: i32) -> (i32, i32) {
    %c0_i32 = arith.constant 0 : i32
    %c0_i32_0 = arith.constant 0 : i32
    return %arg0, %c0_i32 : i32, i32
  }
}

</mosaic_0001>

<bundles_post_ra>
// kernel: tpu_custom_call.1
= control target key start
LH: loop header
LB: loop body
LE: loop exit
PB: predicated region body
PF: predicated region fallthrough
CT: control target
= control target key end

     0   :  { %12 = vsyncpa [#allocation3], 0  ;;  %s2198_s0 = inlined_call_operand.hbm [shape: f32[8,8], index: 0, kind: input, shape index: {}]   ;;  %s2199_s1 = inlined_call_operand.hbm [shape: bf16[8,512], index: 1, kind: input, shape index: {}]   ;;  %s2200_s2 = inlined_call_operand.hbm [shape: f32[1,512], index: 2, kind: input, shape index: {}]   ;;  %s2201_s3 = inlined_call_operand.hbm [shape: bf16[512,384], index: 3, kind: input, shape index: {}]   ;;  %s2202_s4 = inlined_call_operand.vmem [shape: f32[1,384], index: 4, kind: input, shape index: {}]   ;;  %s2203_s5 = inlined_call_operand.hbm [shape: bf16[384,128], index: 5, kind: input, shape index: {}]   ;;  %s2204_s6 = inlined_call_operand.vmem [shape: f32[1,128], index: 6, kind: input, shape index: {}]   ;;  %s2205_s7 = inlined_call_operand.vmem [shape: f32[8,4], index: 7, kind: output, shape index: {}]  }
   0x1   :  { %13 = vsyncpa [#allocation5], 0  ;;  %s31_s26 = sshll.u32 %s2199_s1, 4  ;;  %s32_s26 = int_to_ptr.hbm [resolvable:$true] %s31_s26 }
   0x2   :  { %14 = vsyncpa [#allocation8], 0  ;;  %s2085_s27 = smov [#allocation4]   ;;  %s52_s8 = sshll.u32 %s2201_s3, 4  ;;  %s53_s8 = int_to_ptr.hbm [resolvable:$true] %s52_s8 }
   0x3   :  { %s33_s28 = sshll.u32 %s2085_s27, 4  ;;  %s2086_s9 = smov [#allocation7]   ;;  %s34_s28 = int_to_ptr.vmem [resolvable:$true] %s33_s28 }
   0x4   :  { %36 = dma.hbm_to_vmem [thread:$0]  %s32_s26, 256, %s34_s28, [#allocation5]  }
   0x5   :  { %s54_s10 = sshll.u32 %s2086_s9, 4  ;;  %s2087_s11 = smov 192   ;;  %s55_s10 = int_to_ptr.vmem [resolvable:$true] %s54_s10 }
   0x6   :  { %s2088_s12 = smov 12   ;;  %s20_s1 = sshll.u32 %s2198_s0, 4  ;;  %s21_s1 = int_to_ptr.hbm [resolvable:$true] %s20_s1 }
   0x7   :  { %60 = dma.hbm_to_vmem [thread:$0]  %s53_s8, 12288, %s55_s10, [#allocation8], %s2087_s11, %s2087_s11, %s2088_s12  }
   0x8   :  { %s2089_s15 = smov [#allocation2]   ;;  %s42_s3 = sshll.u32 %s2200_s2, 4  ;;  %s43_s3 = int_to_ptr.hbm [resolvable:$true] %s42_s3 }
   0x9   :  { %s22_s16 = sshll.u32 %s2089_s15, 4  ;;  %s2090_s19 = smov [#allocation6]   ;;  %s23_s16 = int_to_ptr.vmem [resolvable:$true] %s22_s16 }
   0xa   :  { %25 = dma.hbm_to_vmem [thread:$0]  %s21_s1, 128, %s23_s16, [#allocation3]  }
   0xb   :  { %s44_s20 = sshll.u32 %s2090_s19, 4  ;;  %s67_s23 = sshll.u32 %s2203_s5, 4  ;;  %s45_s20 = int_to_ptr.vmem [resolvable:$true] %s44_s20  ;;  %s68_s23 = int_to_ptr.hbm [resolvable:$true] %s67_s23 }
   0xc   :  { %47 = dma.hbm_to_vmem [thread:$0]  %s43_s3, 64, %s45_s20, [#allocation5]  }
   0xd   :  { %s2091_s0 = smov [#allocation9]   ;;  %s2092_s25 = smov 64  }
   0xe   :  { %s69_s24 = sshll.u32 %s2091_s0, 4  ;;  %s2093_s26 = smov 4   ;;  %s70_s24 = int_to_ptr.vmem [resolvable:$true] %s69_s24 }
   0xf   :  { %75 = dma.hbm_to_vmem [thread:$0]  %s68_s23, 3072, %s70_s24, [#allocation8], %s2092_s25, %s2092_s25, %s2093_s26  }
  0x10   :  { %2079 = dma.done.wait [#allocation3], 128  }
  0x11   :  { %2080 = vsyncadd [#allocation3], 4294967168 }
  0x12   :  { %2081 = dma.done.wait [#allocation5], 320  }
  0x13   :  { %2082 = vsyncadd [#allocation5], 4294966976 }
  0x14   :  { %2083 = dma.done.wait [#allocation8], 15360  }
  0x15   :  { %2084 = vsyncadd [#allocation8], 4294951936  ;;  %v101_v0 = vld [vmem:[#allocation4] sm:$0xff]  ;;  %vm117_vm0 = vcmask 1043456   ;;  %v99_v1 = vld [vmem:[#allocation2] sm:$0xff]  ;;  %vm113_vm1 = vcmask 64512  }
  0x16   :  { %v102_v2 = vld [vmem:[#allocation4 + $0x8] sm:$0xff]  ;;  %v105_v3 = vunpack.c.l.b16 %v101_v0  ;;  %v106_v5 = vunpack.c.h.b16 %v101_v0  ;;  %v1433_v6 = vld [vmem:[#allocation7 + $0xa8] sm:$0xf]  ;;  %v1421_v12 = vld [vmem:[#allocation7 + $0x90] sm:$0xf]  ;;  %v2150_v24 = vpack.c.bf16 %v99_v1, %v99_v1  ;;  %vm1334_vm2 = vcmask 31744  }
  0x17   :  { %v108_v4 = vunpack.c.h.b16 %v102_v2  ;;  %v1849_v7 = vld [vmem:[#allocation7 + $0xb0] sm:$0xf0]  ;;  %v1529_v8 = vld [vmem:[#allocation7 + $0x168] sm:$0xf]  ;;  %v107_v9 = vunpack.c.l.b16 %v102_v2  ;;  %v1846_v13 = vld [vmem:[#allocation7 + $0x98] sm:$0xf0] }
  0x18   :  { %v1434_v10 = vor.u32 %v1849_v7, %v1433_v6  ;;  %v1873_v11 = vld [vmem:[#allocation7 + $0x170] sm:$0xf0]  ;;  %v109_v14 = vpack.c.b16 %v105_v3, %v105_v3  ;;  %v110_v16 = vpack.c.b16 %v106_v5, %v106_v5  ;;  %v1422_v19 = vor.u32 %v1846_v13, %v1421_v12  ;;  %v1517_v20 = vld [vmem:[#allocation7 + $0x150] sm:$0xf]  ;;  %v1870_v21 = vld [vmem:[#allocation7 + $0x158] sm:$0xf0] }
  0x19   :  { %v112_v15 = vpack.c.b16 %v108_v4, %v108_v4  ;;  %v111_v17 = vpack.c.b16 %v107_v9, %v107_v9  ;;  %v1530_v18 = vor.u32 %v1873_v11, %v1529_v8  ;;  %v1409_v22 = vld [vmem:[#allocation7 + $0x78] sm:$0xf]  ;;  %v1843_v27 = vld [vmem:[#allocation7 + $0x80] sm:$0xf0]  ;;  %v1518_v31 = vor.u32 %v1870_v21, %v1517_v20  ;;  %v1397_v33 = vld [vmem:[#allocation7 + $0x60] sm:$0xf] }
  0x1a   :  { %888 = vmatpush.bf16.msra.mxu0 %v1434_v10  ;;  %v119_v23 = vsel %vm117_vm0, %v109_v14, 0  ;;  %v122_v26 = vsel %vm117_vm0, %v110_v16, 0  ;;  %v1505_v29 = vld [vmem:[#allocation7 + $0x138] sm:$0xf]  ;;  %v1867_v30 = vld [vmem:[#allocation7 + $0x140] sm:$0xf0]  ;;  %v1410_v32 = vor.u32 %v1843_v27, %v1409_v22 }
  0x1b   :  { %v128_v25 = vsel %vm117_vm0, %v112_v15, 0  ;;  %137 = vmatpush.bf16.msra.mxu3 %v119_v23  ;;  %150 = vmatpush.bf16.msra.mxu1 %v122_v26  ;;  %v125_v28 = vsel %vm117_vm0, %v111_v17, 0  ;;  %v1840_v34 = vld [vmem:[#allocation7 + $0x68] sm:$0xf0]  ;;  %v1625_v35 = vld [vmem:[#allocation7 + $0x228] sm:$0xf]  ;;  %v1506_v43 = vor.u32 %v1867_v30, %v1505_v29 }
  0x1c   :  { %163 = vmatpush.bf16.msra.mxu2 %v125_v28  ;;  %v1897_v36 = vld [vmem:[#allocation7 + $0x230] sm:$0xf0]  ;;  %v1721_v37 = vld [vmem:[#allocation7 + $0x2e8] sm:$0xf]  ;;  %v1613_v41 = vld [vmem:[#allocation7 + $0x210] sm:$0xf]  ;;  %v1398_v44 = vor.u32 %v1840_v34, %v1397_v33 }
  0x1d   :  { %v1921_v38 = vld [vmem:[#allocation7 + $0x2f0] sm:$0xf0]  ;;  %v1626_v39 = vor.u32 %v1897_v36, %v1625_v35  ;;  %v1894_v42 = vld [vmem:[#allocation7 + $0x218] sm:$0xf0]  ;;  %v1493_v45 = vld [vmem:[#allocation7 + $0x120] sm:$0xf] }
  0x1e   :  { %889 = vmatpush.bf16.msra.mxu0 %v1422_v19  ;;  %1343 = vmatmul.msk.bf16.vlgmr.msra.gmra.mxu3 %vm113_vm1, %v2150_v24  ;;  %v1722_v40 = vor.u32 %v1921_v38, %v1721_v37  ;;  %v1709_v46 = vld [vmem:[#allocation7 + $0x2d0] sm:$0xf]  ;;  %v1918_v47 = vld [vmem:[#allocation7 + $0x2d8] sm:$0xf0]  ;;  %v1864_v48 = vld [vmem:[#allocation7 + $0x128] sm:$0xf0]  ;;  %v1614_v51 = vor.u32 %v1894_v42, %v1613_v41 }
  0x1f   :  { %176 = vmatpush.bf16.msrb.mxu3 %v128_v25  ;;  %901 = vmatpush.bf16.msrb.mxu1 %v1530_v18  ;;  %v1385_v49 = vld [vmem:[#allocation7 + $0x48] sm:$0xf]  ;;  %v1837_v50 = vld [vmem:[#allocation7 + $0x50] sm:$0xf0]  ;;  %v1710_v52 = vor.u32 %v1918_v47, %v1709_v46  ;;  %v1601_v53 = vld [vmem:[#allocation7 + $0x1f8] sm:$0xf]  ;;  %v1494_v57 = vor.u32 %v1864_v48, %v1493_v45 }
  0x20   :  { %1344 = vmatmul.msk.bf16.vlgmr.msra.gmra.mxu1 %vm113_vm1, %v2150_v24  ;;  %1345 = vmatmul.msk.bf16.vlgmr.msra.gmra.mxu2 %vm113_vm1, %v2150_v24  ;;  %v1891_v54 = vld [vmem:[#allocation7 + $0x200] sm:$0xf0]  ;;  %v1697_v55 = vld [vmem:[#allocation7 + $0x2b8] sm:$0xf]  ;;  %v1386_v58 = vor.u32 %v1837_v50, %v1385_v49  ;;  %v1481_v59 = vld [vmem:[#allocation7 + $0x108] sm:$0xf] }
  0x21   :  { %914 = vmatpush.bf16.msrb.mxu2 %v1626_v39  ;;  %v1915_v56 = vld [vmem:[#allocation7 + $0x2c0] sm:$0xf0]  ;;  %v1861_v60 = vld [vmem:[#allocation7 + $0x110] sm:$0xf0]  ;;  %v1373_v61 = vld [vmem:[#allocation7 + $0x30] sm:$0xf]  ;;  %v1602_v63 = vor.u32 %v1891_v54, %v1601_v53 }
  0x22   :  { %890 = vmatpush.bf16.msra.mxu0 %v1410_v32  ;;  %v1834_v62 = vld [vmem:[#allocation7 + $0x38] sm:$0xf0]  ;;  %v1698_v0 = vor.u32 %v1915_v56, %v1697_v55  ;;  %v1589_v1 = vld [vmem:[#allocation7 + $0x1e0] sm:$0xf]  ;;  %v1888_v2 = vld [vmem:[#allocation7 + $0x1e8] sm:$0xf0]  ;;  %v1482_v5 = vor.u32 %v1861_v60, %v1481_v59 }
  0x23   :  { %902 = vmatpush.bf16.msrb.mxu1 %v1518_v31  ;;  %927 = vmatpush.bf16.msra.mxu3 %v1722_v40  ;;  %v1685_v3 = vld [vmem:[#allocation7 + $0x2a0] sm:$0xf]  ;;  %v1912_v4 = vld [vmem:[#allocation7 + $0x2a8] sm:$0xf0]  ;;  %v1374_v6 = vor.u32 %v1834_v62, %v1373_v61  ;;  %v1469_v7 = vld [vmem:[#allocation7 + $0xf0] sm:$0xf]  ;;  %v1590_v11 = vor.u32 %v1888_v2, %v1589_v1 }
  0x24   :  { %v1858_v8 = vld [vmem:[#allocation7 + $0xf8] sm:$0xf0]  ;;  %v1361_v9 = vld [vmem:[#allocation7 + $0x18] sm:$0xf]  ;;  %v1831_v10 = vld [vmem:[#allocation7 + $0x20] sm:$0xf0]  ;;  %v1686_v12 = vor.u32 %v1912_v4, %v1685_v3 }
  0x25   :  { %915 = vmatpush.bf16.msrb.mxu2 %v1614_v51  ;;  %v1577_v13 = vld [vmem:[#allocation7 + $0x1c8] sm:$0xf]  ;;  %v1885_v14 = vld [vmem:[#allocation7 + $0x1d0] sm:$0xf0]  ;;  %v1470_v17 = vor.u32 %v1858_v8, %v1469_v7  ;;  %v1362_v18 = vor.u32 %v1831_v10, %v1361_v9  ;;  %v1457_v19 = vld [vmem:[#allocation7 + $0xd8] sm:$0xf] }
  0x26   :  { %891 = vmatpush.bf16.msra.mxu0 %v1398_v44  ;;  %v1673_v15 = vld [vmem:[#allocation7 + $0x288] sm:$0xf]  ;;  %v1909_v16 = vld [vmem:[#allocation7 + $0x290] sm:$0xf0]  ;;  %v1855_v20 = vld [vmem:[#allocation7 + $0xe0] sm:$0xf0]  ;;  %v1578_v25 = vor.u32 %v1885_v14, %v1577_v13 }
  0x27   :  { %903 = vmatpush.bf16.msrb.mxu1 %v1506_v43  ;;  %928 = vmatpush.bf16.msra.mxu3 %v1710_v52  ;;  %v1349_v21 = vld [vmem:[#allocation7] sm:$0xf]  ;;  %v1828_v22 = vld [vmem:[#allocation7 + $0x8] sm:$0xf0]  ;;  %v1435_v26 = vld [vmem:[#allocation7 + $0xb4] sm:$0xf0]  ;;  %v1674_v27 = vor.u32 %v1909_v16, %v1673_v15  ;;  %v1458_v32 = vor.u32 %v1855_v20, %v1457_v19 }
  0x28   :  { %v1848_v23 = vld [vmem:[#allocation7 + $0xac] sm:$0xf]  ;;  %v1565_v28 = vld [vmem:[#allocation7 + $0x1b0] sm:$0xf]  ;;  %v1882_v29 = vld [vmem:[#allocation7 + $0x1b8] sm:$0xf0]  ;;  %v1350_v33 = vor.u32 %v1828_v22, %v1349_v21 }
  0x29   :  { %916 = vmatpush.bf16.msrb.mxu2 %v1602_v63  ;;  %v1661_v30 = vld [vmem:[#allocation7 + $0x270] sm:$0xf]  ;;  %v1906_v31 = vld [vmem:[#allocation7 + $0x278] sm:$0xf0]  ;;  %v1445_v34 = vld [vmem:[#allocation7 + $0xc0] sm:$0xf]  ;;  %v1438_v36 = vor.u32 %v1848_v23, %v1435_v26  ;;  %v1566_v39 = vor.u32 %v1882_v29, %v1565_v28 }
  0x2a   :  { %892 = vmatpush.bf16.msra.mxu0 %v1386_v58  ;;  %v1852_v35 = vld [vmem:[#allocation7 + $0xc8] sm:$0xf0]  ;;  %v1531_v37 = vld [vmem:[#allocation7 + $0x174] sm:$0xf0]  ;;  %v1845_v38 = vld [vmem:[#allocation7 + $0x94] sm:$0xf]  ;;  %v1662_v41 = vor.u32 %v1906_v31, %v1661_v30 }
  0x2b   :  { %904 = vmatpush.bf16.msrb.mxu1 %v1494_v57  ;;  %929 = vmatpush.bf16.msra.mxu3 %v1698_v0  ;;  %v1423_v40 = vld [vmem:[#allocation7 + $0x9c] sm:$0xf0]  ;;  %v1553_v42 = vld [vmem:[#allocation7 + $0x198] sm:$0xf]  ;;  %v1879_v43 = vld [vmem:[#allocation7 + $0x1a0] sm:$0xf0]  ;;  %v1446_v46 = vor.u32 %v1852_v35, %v1445_v34 }
  0x2c   :  { %v1649_v44 = vld [vmem:[#allocation7 + $0x258] sm:$0xf]  ;;  %v1903_v45 = vld [vmem:[#allocation7 + $0x260] sm:$0xf0]  ;;  %v1426_v48 = vor.u32 %v1845_v38, %v1423_v40  ;;  %v1869_v49 = vld [vmem:[#allocation7 + $0x154] sm:$0xf]  ;;  %v1554_v53 = vor.u32 %v1879_v43, %v1553_v42 }
  0x2d   :  { %917 = vmatpush.bf16.msrb.mxu2 %v1590_v11  ;;  %v1519_v50 = vld [vmem:[#allocation7 + $0x15c] sm:$0xf0]  ;;  %v1842_v51 = vld [vmem:[#allocation7 + $0x7c] sm:$0xf]  ;;  %v1411_v52 = vld [vmem:[#allocation7 + $0x84] sm:$0xf0]  ;;  %v1650_v54 = vor.u32 %v1903_v45, %v1649_v44 }
  0x2e   :  { %893 = vmatpush.bf16.msra.mxu0 %v1374_v6  ;;  %1346 = vmatmul.msk.bf16.vlgmr.msrb.gmra.mxu3 %vm113_vm1, %v2150_v24  ;;  %v1872_v24 = vld [vmem:[#allocation7 + $0x16c] sm:$0xf]  ;;  %v1541_v55 = vld [vmem:[#allocation7 + $0x180] sm:$0xf]  ;;  %v1627_v60 = vld [vmem:[#allocation7 + $0x234] sm:$0xf0]  ;;  %v1522_v63 = vor.u32 %v1869_v49, %v1519_v50  ;;  %v1414_v0 = vor.u32 %v1842_v51, %v1411_v52 }
  0x2f   :  { %905 = vmatpush.bf16.msrb.mxu1 %v1482_v5  ;;  %930 = vmatpush.bf16.msra.mxu3 %v1686_v12  ;;  %v1534_v47 = vor.u32 %v1872_v24, %v1531_v37  ;;  %v1876_v56 = vld [vmem:[#allocation7 + $0x188] sm:$0xf0]  ;;  %v1637_v57 = vld [vmem:[#allocation7 + $0x240] sm:$0xf]  ;;  %v1723_v62 = vld [vmem:[#allocation7 + $0x2f4] sm:$0xf0] }
  0x30   :  { %v1900_v58 = vld [vmem:[#allocation7 + $0x248] sm:$0xf0]  ;;  %v1866_v1 = vld [vmem:[#allocation7 + $0x13c] sm:$0xf]  ;;  %v1507_v2 = vld [vmem:[#allocation7 + $0x144] sm:$0xf0]  ;;  %v1542_v5 = vor.u32 %v1876_v56, %v1541_v55 }
  0x31   :  { %918 = vmatpush.bf16.msrb.mxu2 %v1578_v25  ;;  %v1896_v59 = vld [vmem:[#allocation7 + $0x22c] sm:$0xf]  ;;  %v1839_v3 = vld [vmem:[#allocation7 + $0x64] sm:$0xf]  ;;  %v1399_v4 = vld [vmem:[#allocation7 + $0x6c] sm:$0xf0]  ;;  %v1638_v6 = vor.u32 %v1900_v58, %v1637_v57  ;;  %v1510_v9 = vor.u32 %v1866_v1, %v1507_v2 }
  0x32   :  { %894 = vmatpush.bf16.msra.mxu0 %v1362_v18  ;;  %v1920_v61 = vld [vmem:[#allocation7 + $0x2ec] sm:$0xf]  ;;  %v1630_v7 = vor.u32 %v1896_v59, %v1627_v60  ;;  %v1402_v10 = vor.u32 %v1839_v3, %v1399_v4  ;;  %v1863_v11 = vld [vmem:[#allocation7 + $0x124] sm:$0xf]  ;;  %v1495_v12 = vld [vmem:[#allocation7 + $0x12c] sm:$0xf0] }
  0x33   :  { %906 = vmatpush.bf16.msrb.mxu1 %v1470_v17  ;;  %931 = vmatpush.bf16.msra.mxu3 %v1674_v27  ;;  %v1726_v8 = vor.u32 %v1920_v61, %v1723_v62  ;;  %v1836_v13 = vld [vmem:[#allocation7 + $0x4c] sm:$0xf]  ;;  %v1387_v14 = vld [vmem:[#allocation7 + $0x54] sm:$0xf0]  ;;  %v1498_v15 = vor.u32 %v1863_v11, %v1495_v12  ;;  %v1833_v20 = vld [vmem:[#allocation7 + $0x34] sm:$0xf] }
  0x34   :  { %v1390_v16 = vor.u32 %v1836_v13, %v1387_v14  ;;  %v1860_v17 = vld [vmem:[#allocation7 + $0x10c] sm:$0xf]  ;;  %v1483_v18 = vld [vmem:[#allocation7 + $0x114] sm:$0xf0]  ;;  %v1375_v21 = vld [vmem:[#allocation7 + $0x3c] sm:$0xf0] }
  0x35   :  { %919 = vmatpush.bf16.msrb.mxu2 %v1566_v39  ;;  %v1486_v19 = vor.u32 %v1860_v17, %v1483_v18  ;;  %v1857_v22 = vld [vmem:[#allocation7 + $0xf4] sm:$0xf]  ;;  %v1378_v23 = vor.u32 %v1833_v20, %v1375_v21  ;;  %v1471_v25 = vld [vmem:[#allocation7 + $0xfc] sm:$0xf0]  ;;  %v2163_v31 = vld [vmem:[#allocation6] sm:$0xf] }
  0x36   :  { %895 = vmatpush.bf16.msra.mxu0 %v1350_v33  ;;  %v1893_v26 = vld [vmem:[#allocation7 + $0x214] sm:$0xf]  ;;  %v1474_v27 = vor.u32 %v1857_v22, %v1471_v25  ;;  %v1615_v28 = vld [vmem:[#allocation7 + $0x21c] sm:$0xf0]  ;;  %v1830_v34 = vld [vmem:[#allocation7 + $0x1c] sm:$0xf] }
  0x37   :  { %907 = vmatpush.bf16.msrb.mxu1 %v1458_v32  ;;  %932 = vmatpush.bf16.msra.mxu3 %v1662_v41  ;;  %v1917_v29 = vld [vmem:[#allocation7 + $0x2d4] sm:$0xf]  ;;  %v1711_v30 = vld [vmem:[#allocation7 + $0x2dc] sm:$0xf0]  ;;  %v1618_v32 = vor.u32 %v1893_v26, %v1615_v28  ;;  %v1363_v35 = vld [vmem:[#allocation7 + $0x24] sm:$0xf0] }
  0x38   :  { %v1714_v33 = vor.u32 %v1917_v29, %v1711_v30  ;;  %v1366_v24 = vor.u32 %v1830_v34, %v1363_v35  ;;  %v1459_v37 = vld [vmem:[#allocation7 + $0xe4] sm:$0xf0]  ;;  %v1890_v38 = vld [vmem:[#allocation7 + $0x1fc] sm:$0xf]  ;;  %v186_v44 = vperm.slane %v2163_v31, 0  ;;  %v187_v45 = vperm.slane %v2163_v31, 1 }
  0x39   :  { %920 = vmatpush.bf16.msrb.mxu2 %v1554_v53  ;;  %v1603_v39 = vld [vmem:[#allocation7 + $0x204] sm:$0xf0]  ;;  %v1914_v42 = vld [vmem:[#allocation7 + $0x2bc] sm:$0xf]  ;;  %v1851_v49 = vld [vmem:[#allocation7 + $0xc4] sm:$0xf] }
  0x3a   :  { %940 = vmatpush.bf16.msrb.mxu0 %v1438_v36  ;;  %v1854_v36 = vld [vmem:[#allocation7 + $0xdc] sm:$0xf]  ;;  %v1606_v41 = vor.u32 %v1890_v38, %v1603_v39  ;;  %v1699_v43 = vld [vmem:[#allocation7 + $0x2c4] sm:$0xf0]  ;;  %v1447_v51 = vld [vmem:[#allocation7 + $0xcc] sm:$0xf0]  ;;  %v194_v62 = vpack.c.bf16 %v187_v45, %v186_v44 }
  0x3b   :  { %908 = vmatpush.bf16.msrb.mxu1 %v1446_v46  ;;  %933 = vmatpush.bf16.msra.mxu3 %v1650_v54  ;;  %v1462_v40 = vor.u32 %v1854_v36, %v1459_v37  ;;  %v1702_v46 = vor.u32 %v1914_v42, %v1699_v43  ;;  %v1887_v52 = vld [vmem:[#allocation7 + $0x1e4] sm:$0xf]  ;;  %v1591_v53 = vld [vmem:[#allocation7 + $0x1ec] sm:$0xf0]  ;;  %v1450_v54 = vor.u32 %v1851_v49, %v1447_v51  ;;  %v1884_v59 = vld [vmem:[#allocation7 + $0x1cc] sm:$0xf] }
  0x3c   :  { %v1594_v55 = vor.u32 %v1887_v52, %v1591_v53  ;;  %v1911_v56 = vld [vmem:[#allocation7 + $0x2a4] sm:$0xf]  ;;  %v1687_v57 = vld [vmem:[#allocation7 + $0x2ac] sm:$0xf0]  ;;  %v1579_v60 = vld [vmem:[#allocation7 + $0x1d4] sm:$0xf0] }
  0x3d   :  { %921 = vmatpush.bf16.msrb.mxu2 %v1542_v5  ;;  %v1690_v58 = vor.u32 %v1911_v56, %v1687_v57  ;;  %v1908_v61 = vld [vmem:[#allocation7 + $0x28c] sm:$0xf]  ;;  %v1881_v2 = vld [vmem:[#allocation7 + $0x1b4] sm:$0xf]  ;;  %v1567_v3 = vld [vmem:[#allocation7 + $0x1bc] sm:$0xf0]  ;;  %v198_v5 = vunpack.c.l.b16 %v194_v62 }
  0x3e   :  { %941 = vmatpush.bf16.msrb.mxu0 %v1426_v48  ;;  %v1351_v48 = vld [vmem:[#allocation7 + $0xc] sm:$0xf0]  ;;  %v1905_v4 = vld [vmem:[#allocation7 + $0x274] sm:$0xf]  ;;  %v1555_v11 = vld [vmem:[#allocation7 + $0x1a4] sm:$0xf0] }
  0x3f   :  { %953 = vmatpush.bf16.msra.mxu1 %v1534_v47  ;;  %934 = vmatpush.bf16.msra.mxu3 %v1638_v6  ;;  %v1827_v47 = vld [vmem:[#allocation7 + $0x4] sm:$0xf]  ;;  %v199_v6 = vunpack.c.h.b16 %v194_v62  ;;  %v1902_v12 = vld [vmem:[#allocation7 + $0x25c] sm:$0xf]  ;;  %v202_v13 = vpack.c.b16 %v198_v5, %v198_v5  ;;  %v188_v18 = vperm.slane %v2163_v31, 2 }
  0x40   :  { %v1354_v50 = vor.u32 %v1827_v47, %v1351_v48  ;;  %v1875_v22 = vld [vmem:[#allocation7 + $0x184] sm:$0xf]  ;;  %v1639_v28 = vld [vmem:[#allocation7 + $0x24c] sm:$0xf0]  ;;  %v1850_v47 = vld [vmem:[#allocation7 + $0xb8] sm:$0xf0] }
  0x41   :  { %966 = vmatpush.bf16.msra.mxu2 %v1630_v7  ;;  %v1570_v7 = vor.u32 %v1881_v2, %v1567_v3  ;;  %v203_v14 = vpack.c.b16 %v199_v6, %v199_v6  ;;  %v207_v20 = vpack.i.b16 %v202_v13, %v202_v13  ;;  %v1899_v25 = vld [vmem:[#allocation7 + $0x244] sm:$0xf]  ;;  %v1441_v42 = vld [vmem:[#allocation7 + $0xb0] sm:$0xf]  ;;  %v1874_v49 = vld [vmem:[#allocation7 + $0x178] sm:$0xf0] }
  0x42   :  { %942 = vmatpush.bf16.msrb.mxu0 %v1414_v0  ;;  %v1675_v0 = vld [vmem:[#allocation7 + $0x294] sm:$0xf0]  ;;  %v1642_v29 = vor.u32 %v1899_v25, %v1639_v28  ;;  %v1537_v48 = vld [vmem:[#allocation7 + $0x170] sm:$0xf]  ;;  %v1442_v53 = vor.u32 %v1850_v47, %v1441_v42  ;;  %v1844_v5 = vld [vmem:[#allocation7 + $0x88] sm:$0xf0] }
  0x43   :  { %954 = vmatpush.bf16.msra.mxu1 %v1522_v63  ;;  %979 = vmatpush.bf16.msrb.mxu3 %v1726_v8  ;;  %v1582_v63 = vor.u32 %v1884_v59, %v1579_v60  ;;  %v1678_v1 = vor.u32 %v1908_v61, %v1675_v0  ;;  %v1663_v8 = vld [vmem:[#allocation7 + $0x27c] sm:$0xf0]  ;;  %v211_v21 = vpack.i.b16 %v203_v14, %v203_v14  ;;  %v1429_v57 = vld [vmem:[#allocation7 + $0x98] sm:$0xf]  ;;  %v1847_v61 = vld [vmem:[#allocation7 + $0xa0] sm:$0xf0] }
  0x44   :  { %v1525_v62 = vld [vmem:[#allocation7 + $0x158] sm:$0xf]  ;;  %v1430_v2 = vor.u32 %v1847_v61, %v1429_v57  ;;  %v1513_v6 = vld [vmem:[#allocation7 + $0x140] sm:$0xf]  ;;  %v1393_v25 = vld [vmem:[#allocation7 + $0x50] sm:$0xf] }
  0x45   :  { %967 = vmatpush.bf16.msra.mxu2 %v1618_v32  ;;  %v209_v32 = vperm.slane %v207_v20, 0  ;;  %v1862_v28 = vld [vmem:[#allocation7 + $0x118] sm:$0xf0]  ;;  %v1717_v47 = vld [vmem:[#allocation7 + $0x2d8] sm:$0xf] }
  0x46   :  { %943 = vmatpush.bf16.msrb.mxu0 %v1402_v10  ;;  %v1878_v10 = vld [vmem:[#allocation7 + $0x19c] sm:$0xf]  ;;  %v1609_v57 = vld [vmem:[#allocation7 + $0x200] sm:$0xf] }
  0x47   :  { %955 = vmatpush.bf16.msra.mxu1 %v1510_v9  ;;  %980 = vmatpush.bf16.msrb.mxu3 %v1714_v33  ;;  %v1666_v9 = vor.u32 %v1905_v4, %v1663_v8  ;;  %v213_v33 = vperm.slane %v211_v21, 0  ;;  %v1417_v4 = vld [vmem:[#allocation7 + $0x80] sm:$0xf] }
  0x48   :  { %v1705_v61 = vld [vmem:[#allocation7 + $0x2c0] sm:$0xf] }
  0x49   :  { %968 = vmatpush.bf16.msra.mxu2 %v1606_v41  ;;  %v227_v37 = vunpack.c.l.bf16 %v213_v33 }
  0x4a   :  { %944 = vmatpush.bf16.msrb.mxu0 %v1390_v16  ;;  %v1651_v16 = vld [vmem:[#allocation7 + $0x264] sm:$0xf0] }
  0x4b   :  { %956 = vmatpush.bf16.msra.mxu1 %v1498_v15  ;;  %981 = vmatpush.bf16.msrb.mxu3 %v1702_v46  ;;  %v1558_v15 = vor.u32 %v1878_v10, %v1555_v11  ;;  %v1654_v17 = vor.u32 %v1902_v12, %v1651_v16  ;;  %v1405_v11 = vld [vmem:[#allocation7 + $0x68] sm:$0xf] }
  0x4c   :  { %v1501_v16 = vld [vmem:[#allocation7 + $0x128] sm:$0xf] }
  0x4d   :  { %969 = vmatpush.bf16.msra.mxu2 %v1594_v55 }
  0x4e   :  { %945 = vmatpush.bf16.msrb.mxu0 %v1378_v23  ;;  %v1543_v23 = vld [vmem:[#allocation7 + $0x18c] sm:$0xf0] }
  0x4f   :  { %957 = vmatpush.bf16.msra.mxu1 %v1486_v19  ;;  %982 = vmatpush.bf16.msrb.mxu3 %v1690_v58  ;;  %v189_v19 = vperm.slane %v2163_v31, 3 }
  0x51   :  { %970 = vmatpush.bf16.msra.mxu2 %v1582_v63  ;;  %v195_v30 = vpack.c.bf16 %v189_v19, %v188_v18  ;;  %v1871_v63 = vld [vmem:[#allocation7 + $0x160] sm:$0xf0] }
  0x52   :  { %946 = vmatpush.bf16.msrb.mxu0 %v1366_v24  ;;  %v226_v24 = vunpack.c.l.bf16 %v209_v32  ;;  %v1526_v3 = vor.u32 %v1871_v63, %v1525_v62  ;;  %v1916_v62 = vld [vmem:[#allocation7 + $0x2c8] sm:$0xf0] }
  0x53   :  { %958 = vmatpush.bf16.msra.mxu1 %v1474_v27  ;;  %983 = vmatpush.bf16.msrb.mxu3 %v1678_v1  ;;  %v1546_v27 = vor.u32 %v1875_v22, %v1543_v23  ;;  %v200_v35 = vunpack.c.l.b16 %v195_v30  ;;  %v201_v36 = vunpack.c.h.b16 %v195_v30  ;;  %v1898_v30 = vld [vmem:[#allocation7 + $0x238] sm:$0xf0] }
  0x55   :  { %971 = vmatpush.bf16.msra.mxu2 %v1570_v7  ;;  %v204_v43 = vpack.c.b16 %v200_v35, %v200_v35  ;;  %v205_v44 = vpack.c.b16 %v201_v36, %v201_v36  ;;  %v1868_v7 = vld [vmem:[#allocation7 + $0x148] sm:$0xf0]  ;;  %v1922_v35 = vld [vmem:[#allocation7 + $0x2f8] sm:$0xf0] }
  0x56   :  { %947 = vmatpush.bf16.msrb.mxu0 %v1354_v50  ;;  %v1514_v10 = vor.u32 %v1868_v7, %v1513_v6  ;;  %v1853_v6 = vld [vmem:[#allocation7 + $0xd0] sm:$0xf0]  ;;  %v1597_v7 = vld [vmem:[#allocation7 + $0x1e8] sm:$0xf] }
  0x57   :  { %959 = vmatpush.bf16.msra.mxu1 %v1462_v40  ;;  %984 = vmatpush.bf16.msrb.mxu3 %v1666_v9  ;;  %v215_v55 = vpack.i.b16 %v204_v43, %v204_v43  ;;  %v219_v56 = vpack.i.b16 %v205_v44, %v205_v44  ;;  %v1418_v9 = vor.u32 %v1844_v5, %v1417_v4  ;;  %v1477_v43 = vld [vmem:[#allocation7 + $0xf8] sm:$0xf]  ;;  %v1859_v44 = vld [vmem:[#allocation7 + $0x100] sm:$0xf0]  ;;  %v1453_v5 = vld [vmem:[#allocation7 + $0xc8] sm:$0xf] }
  0x58   :  { %v1706_v4 = vor.u32 %v1916_v62, %v1705_v61 }
  0x59   :  { %972 = vmatpush.bf16.msra.mxu2 %v1558_v15  ;;  %v217_v0 = vperm.slane %v215_v55, 0  ;;  %v221_v1 = vperm.slane %v219_v56, 0  ;;  %v1841_v15 = vld [vmem:[#allocation7 + $0x70] sm:$0xf0]  ;;  %v1465_v55 = vld [vmem:[#allocation7 + $0xe0] sm:$0xf] }
  0x5a   :  { %v1406_v20 = vor.u32 %v1841_v15, %v1405_v11  ;;  %v1856_v56 = vld [vmem:[#allocation7 + $0xe8] sm:$0xf0]  ;;  %v1585_v15 = vld [vmem:[#allocation7 + $0x1d0] sm:$0xf] }
  0x5b   :  { %960 = vmatpush.bf16.msra.mxu1 %v1450_v54  ;;  %985 = vmatpush.bf16.msrb.mxu3 %v1654_v17  ;;  %v1538_v54 = vor.u32 %v1874_v49, %v1537_v48  ;;  %v228_v13 = vunpack.c.l.bf16 %v217_v0  ;;  %v229_v14 = vunpack.c.l.bf16 %v221_v1  ;;  %v1865_v17 = vld [vmem:[#allocation7 + $0x130] sm:$0xf0]  ;;  %v1919_v48 = vld [vmem:[#allocation7 + $0x2e0] sm:$0xf0]  ;;  %v1466_v0 = vor.u32 %v1856_v56, %v1465_v55  ;;  %v1357_v1 = vld [vmem:[#allocation7 + $0x8] sm:$0xf] }
  0x5c   :  { %v1502_v21 = vor.u32 %v1865_v17, %v1501_v16  ;;  %v1886_v16 = vld [vmem:[#allocation7 + $0x1d8] sm:$0xf0]  ;;  %v1681_v17 = vld [vmem:[#allocation7 + $0x290] sm:$0xf]  ;;  %v1924_v55 = vld [vmem:[#allocation9 + $0x8] sm:$0xff] }
  0x5d   :  { %973 = vmatpush.bf16.msra.mxu2 %v1546_v27  ;;  %v1489_v27 = vld [vmem:[#allocation7 + $0x110] sm:$0xf]  ;;  %v1932_v56 = vld [vmem:[#allocation9 + $0x48] sm:$0xff] }
  0x5f   :  { %986 = vmatpush.bf16.msrb.mxu3 %v1642_v29  ;;  %v1633_v29 = vld [vmem:[#allocation7 + $0x230] sm:$0xf] }
  0x9d   :  { %v152_v26 = vpop.f32.mrf.mxu1 }
  0xa1   :  { %v139_v34 = vpop.f32.mrf.mxu3 }
  0xa2   :  { %v182_v31 = vpack.c.bf16 %v152_v26, %v139_v34  ;;  %v1838_v26 = vld [vmem:[#allocation7 + $0x58] sm:$0xf0]  ;;  %v1729_v34 = vld [vmem:[#allocation7 + $0x2f0] sm:$0xf] }
  0xa3   :  { %v165_v38 = vpop.f32.mrf.mxu2  ;;  %v1730_v42 = vor.u32 %v1922_v35, %v1729_v34  ;;  %v1549_v35 = vld [vmem:[#allocation7 + $0x188] sm:$0xf] }
  0xa4   :  { %v222_v40 = vunpack.c.l.bf16 %v182_v31  ;;  %v223_v41 = vunpack.c.h.bf16 %v182_v31 }
  0xa5   :  { %v154_v39 = vpop.f32.mrf.mxu1 }
  0xa6   :  { %v230_v45 = vadd.f32 %v226_v24, %v222_v40  ;;  %v231_v46 = vadd.f32 %v227_v37, %v223_v41  ;;  %v1394_v37 = vor.u32 %v1838_v26, %v1393_v25  ;;  %v1381_v39 = vld [vmem:[#allocation7 + $0x38] sm:$0xf]  ;;  %v1835_v40 = vld [vmem:[#allocation7 + $0x40] sm:$0xf0]  ;;  %v1634_v41 = vor.u32 %v1898_v30, %v1633_v29  ;;  %v1880_v29 = vld [vmem:[#allocation7 + $0x1a8] sm:$0xf0] }
  0xa7   :  { %v1382_v49 = vor.u32 %v1835_v40, %v1381_v39  ;;  %v1907_v25 = vld [vmem:[#allocation7 + $0x280] sm:$0xf0]  ;;  %v1657_v30 = vld [vmem:[#allocation7 + $0x260] sm:$0xf]  ;;  %v1930_v39 = vld [vmem:[#allocation9 + $0x38] sm:$0xff] }
  0xa8   :  { %v240_v50 = vmax.f32 %v230_v45, 0.0  ;;  %v241_v51 = vmax.f32 %v231_v46, 0.0  ;;  %v1621_v45 = vld [vmem:[#allocation7 + $0x218] sm:$0xf]  ;;  %v1895_v46 = vld [vmem:[#allocation7 + $0x220] sm:$0xf0] }
  0xa9   :  { %v141_v52 = vpop.f32.mrf.mxu3  ;;  %v1938_v40 = vld [vmem:[#allocation9 + $0x78] sm:$0xff] }
  0xaa   :  { %v2169_v58 = vpack.c.bf16 %v240_v50, %v240_v50  ;;  %v2171_v59 = vpack.c.bf16 %v241_v51, %v241_v51  ;;  %v1478_v50 = vor.u32 %v1859_v44, %v1477_v43  ;;  %v1369_v51 = vld [vmem:[#allocation7 + $0x20] sm:$0xf]  ;;  %v1832_v52 = vld [vmem:[#allocation7 + $0x28] sm:$0xf0] }
  0xab   :  { %v167_v60 = vpop.f32.mrf.mxu2  ;;  %v1370_v63 = vor.u32 %v1832_v52, %v1369_v51  ;;  %v1928_v43 = vld [vmem:[#allocation9 + $0x28] sm:$0xff]  ;;  %v1925_v52 = vld [vmem:[#allocation9 + $0x10] sm:$0xff] }
  0xac   :  { %896 = vmatmul.bf16.vlgmr.msra.gmra.mxu0 %v2169_v58  ;;  %909 = vmatmul.bf16.vlgmr.msrb.gmra.mxu1 %v2171_v59  ;;  %v1892_v60 = vld [vmem:[#allocation7 + $0x208] sm:$0xf0] }
  0xad   :  { %992 = vmatpush.bf16.msra.mxu0 %v1442_v53  ;;  %1005 = vmatpush.bf16.msrb.mxu1 %v1538_v54  ;;  %v1622_v53 = vor.u32 %v1895_v46, %v1621_v45  ;;  %v1718_v54 = vor.u32 %v1919_v48, %v1717_v47  ;;  %v1936_v44 = vld [vmem:[#allocation9 + $0x68] sm:$0xff]  ;;  %v1927_v47 = vld [vmem:[#allocation9 + $0x20] sm:$0xff] }
  0xae   :  { %v1935_v48 = vld [vmem:[#allocation9 + $0x60] sm:$0xff] }
  0xb1   :  { %v178_v8 = vpop.f32.mrf.mxu3  ;;  %993 = vmatpush.bf16.msra.mxu0 %v1430_v2  ;;  %1006 = vmatpush.bf16.msrb.mxu1 %v1526_v3  ;;  %v1829_v2 = vld [vmem:[#allocation7 + $0x10] sm:$0xf0]  ;;  %v1610_v3 = vor.u32 %v1892_v60, %v1609_v57  ;;  %v1944_v57 = vld [vmem:[#allocation9 + $0xa8] sm:$0xff]  ;;  %v1046_v60 = vld [vmem:[%s2202_s4] sm:$0x7] }
  0xb2   :  { %v183_v12 = vpack.c.bf16 %v178_v8, %v165_v38  ;;  %v1490_v38 = vor.u32 %v1862_v28, %v1489_v27  ;;  %v1889_v8 = vld [vmem:[#allocation7 + $0x1f0] sm:$0xf0]  ;;  %v1358_v11 = vor.u32 %v1829_v2, %v1357_v1  ;;  %v1561_v28 = vld [vmem:[#allocation7 + $0x1a0] sm:$0xf]  ;;  %v1048_v2 = vperm.slane %v1046_v60, 0 }
  0xb3   :  { %v1943_v1 = vld [vmem:[#allocation9 + $0xa0] sm:$0xff] }
  0xb4   :  { %v224_v18 = vunpack.c.l.bf16 %v183_v12  ;;  %v225_v19 = vunpack.c.h.bf16 %v183_v12  ;;  %v1454_v12 = vor.u32 %v1853_v6, %v1453_v5  ;;  %v1942_v6 = vld [vmem:[#allocation9 + $0x98] sm:$0xff] }
  0xb5   :  { %994 = vmatpush.bf16.msra.mxu0 %v1418_v9  ;;  %1007 = vmatpush.bf16.msrb.mxu1 %v1514_v10  ;;  %v1693_v9 = vld [vmem:[#allocation7 + $0x2a8] sm:$0xf]  ;;  %v1913_v10 = vld [vmem:[#allocation7 + $0x2b0] sm:$0xf0] }
  0xb6   :  { %v232_v22 = vadd.f32 %v228_v13, %v224_v18  ;;  %v233_v23 = vadd.f32 %v229_v14, %v225_v19  ;;  %v1598_v13 = vor.u32 %v1889_v8, %v1597_v7  ;;  %v1694_v14 = vor.u32 %v1913_v10, %v1693_v9  ;;  %v1910_v18 = vld [vmem:[#allocation7 + $0x298] sm:$0xf0]  ;;  %v1941_v10 = vld [vmem:[#allocation9 + $0x90] sm:$0xff] }
  0xb7   :  { %v1586_v19 = vor.u32 %v1886_v16, %v1585_v15  ;;  %v1940_v15 = vld [vmem:[#allocation9 + $0x88] sm:$0xff] }
  0xb8   :  { %v243_v32 = vmax.f32 %v233_v23, 0.0  ;;  %v242_v33 = vmax.f32 %v232_v22, 0.0  ;;  %v1883_v22 = vld [vmem:[#allocation7 + $0x1c0] sm:$0xf0]  ;;  %v1669_v23 = vld [vmem:[#allocation7 + $0x278] sm:$0xf] }
  0xb9   :  { %v180_v36 = vpop.f32.mrf.mxu3  ;;  %995 = vmatpush.bf16.msra.mxu0 %v1406_v20  ;;  %1008 = vmatpush.bf16.msrb.mxu1 %v1502_v21  ;;  %v1682_v20 = vor.u32 %v1910_v18, %v1681_v17  ;;  %v1573_v21 = vld [vmem:[#allocation7 + $0x1b8] sm:$0xf]  ;;  %v1670_v27 = vor.u32 %v1907_v25, %v1669_v23 }
  0xba   :  { %v2175_v31 = vpack.c.bf16 %v243_v32, %v243_v32  ;;  %v2177_v24 = vpack.c.bf16 %v242_v33, %v242_v33  ;;  %v1574_v26 = vor.u32 %v1883_v22, %v1573_v21  ;;  %v1904_v32 = vld [vmem:[#allocation7 + $0x268] sm:$0xf0]  ;;  %v1562_v33 = vor.u32 %v1880_v29, %v1561_v28  ;;  %v1877_v36 = vld [vmem:[#allocation7 + $0x190] sm:$0xf0] }
  0xbb   :  { %v1658_v34 = vor.u32 %v1904_v32, %v1657_v30 }
  0xbc   :  { %922 = vmatmul.bf16.vlgmr.msrb.gmra.mxu2 %v2177_v24  ;;  %935 = vmatmul.bf16.vlgmr.msra.gmra.mxu3 %v2175_v31 }
  0xbd   :  { %948 = vmatmul.bf16.vlgmr.msrb.gmra.mxu0 %v2169_v58  ;;  %961 = vmatmul.bf16.vlgmr.msra.gmra.mxu1 %v2171_v59 }
  0xbe   :  { %996 = vmatpush.bf16.msra.mxu0 %v1394_v37  ;;  %1009 = vmatpush.bf16.msrb.mxu1 %v1490_v38  ;;  %v1645_v37 = vld [vmem:[#allocation7 + $0x248] sm:$0xf]  ;;  %v1901_v38 = vld [vmem:[#allocation7 + $0x250] sm:$0xf0] }
  0xbf   :  { %1018 = vmatpush.bf16.msrb.mxu2 %v1634_v41  ;;  %1031 = vmatpush.bf16.msra.mxu3 %v1730_v42  ;;  %v1929_v41 = vld [vmem:[#allocation9 + $0x30] sm:$0xff] }
  0xc0   :  { %v1937_v42 = vld [vmem:[#allocation9 + $0x70] sm:$0xff] }
  0xc2   :  { %997 = vmatpush.bf16.msra.mxu0 %v1382_v49  ;;  %1010 = vmatpush.bf16.msrb.mxu1 %v1478_v50  ;;  %v1946_v49 = vld [vmem:[#allocation9 + $0xb8] sm:$0xff] }
  0xc3   :  { %1019 = vmatpush.bf16.msrb.mxu2 %v1622_v53  ;;  %1032 = vmatpush.bf16.msra.mxu3 %v1718_v54  ;;  %v1933_v53 = vld [vmem:[#allocation9 + $0x50] sm:$0xff] }
  0xc4   :  { %v1945_v54 = vld [vmem:[#allocation9 + $0xb0] sm:$0xff] }
  0xc6   :  { %998 = vmatpush.bf16.msra.mxu0 %v1370_v63  ;;  %1011 = vmatpush.bf16.msrb.mxu1 %v1466_v0  ;;  %v1923_v63 = vld [vmem:[#allocation9] sm:$0xff] }
  0xc7   :  { %1020 = vmatpush.bf16.msrb.mxu2 %v1610_v3  ;;  %1033 = vmatpush.bf16.msra.mxu3 %v1706_v4  ;;  %v1931_v0 = vld [vmem:[#allocation9 + $0x40] sm:$0xff]  ;;  %v1049_v3 = vperm.slane %v1046_v60, 1 }
  0xc9   :  { %v1054_v7 = vpack.c.bf16 %v1049_v3, %v1048_v2 }
  0xca   :  { %999 = vmatpush.bf16.msra.mxu0 %v1358_v11  ;;  %1012 = vmatpush.bf16.msrb.mxu1 %v1454_v12 }
  0xcb   :  { %1021 = vmatpush.bf16.msrb.mxu2 %v1598_v13  ;;  %1034 = vmatpush.bf16.msra.mxu3 %v1694_v14  ;;  %v1058_v11 = vunpack.c.l.b16 %v1054_v7  ;;  %v1059_v12 = vunpack.c.h.b16 %v1054_v7 }
  0xcc   :  { %974 = vmatmul.bf16.vlgmr.msra.gmra.mxu2 %v2177_v24  ;;  %987 = vmatmul.bf16.vlgmr.msrb.gmra.mxu3 %v2175_v31 }
  0xcd   :  { %1000 = vmatmul.bf16.vlgmr.msra.gmra.mxu0 %v2169_v58  ;;  %1013 = vmatmul.bf16.vlgmr.msrb.gmra.mxu1 %v2171_v59  ;;  %v1550_v58 = vor.u32 %v1877_v36, %v1549_v35  ;;  %v1646_v59 = vor.u32 %v1901_v38, %v1645_v37  ;;  %v1061_v16 = vpack.c.b16 %v1058_v11, %v1058_v11 }
  0xce   :  { %1288 = vmatpush.bf16.msrb.mxu0 %v1930_v39  ;;  %1301 = vmatpush.bf16.msra.mxu1 %v1938_v40  ;;  %v1062_v17 = vpack.c.b16 %v1059_v12, %v1059_v12 }
  0xcf   :  { %1022 = vmatpush.bf16.msrb.mxu2 %v1586_v19  ;;  %1035 = vmatpush.bf16.msra.mxu3 %v1682_v20  ;;  %v1939_v20 = vld [vmem:[#allocation9 + $0x80] sm:$0xff]  ;;  %v1065_v22 = vpack.i.b16 %v1061_v16, %v1061_v16 }
  0xd0   :  { %v1069_v23 = vpack.i.b16 %v1062_v17, %v1062_v17 }
  0xd1   :  { %v1067_v32 = vperm.slane %v1065_v22, 0 }
  0xd2   :  { %1289 = vmatpush.bf16.msrb.mxu0 %v1929_v41  ;;  %1302 = vmatpush.bf16.msra.mxu1 %v1937_v42 }
  0xd3   :  { %1023 = vmatpush.bf16.msrb.mxu2 %v1574_v26  ;;  %1036 = vmatpush.bf16.msra.mxu3 %v1670_v27  ;;  %v1050_v27 = vperm.slane %v1046_v60, 2 }
  0xd5   :  { %v1055_v38 = vpack.c.bf16 %v1050_v27, %v1050_v27 }
  0xd6   :  { %1290 = vmatpush.bf16.msrb.mxu0 %v1928_v43  ;;  %1303 = vmatpush.bf16.msra.mxu1 %v1936_v44 }
  0xd7   :  { %1024 = vmatpush.bf16.msrb.mxu2 %v1562_v33  ;;  %1037 = vmatpush.bf16.msra.mxu3 %v1658_v34  ;;  %v1071_v33 = vperm.slane %v1069_v23, 0  ;;  %v1060_v42 = vunpack.c.l.b16 %v1055_v38 }
  0xd9   :  { %v1080_v39 = vunpack.c.l.bf16 %v1071_v33 }
  0xda   :  { %1291 = vmatpush.bf16.msrb.mxu0 %v1927_v47  ;;  %1304 = vmatpush.bf16.msra.mxu1 %v1935_v48 }
  0xdb   :  { %1025 = vmatpush.bf16.msrb.mxu2 %v1550_v58  ;;  %1038 = vmatpush.bf16.msra.mxu3 %v1646_v59  ;;  %v1079_v59 = vunpack.c.l.bf16 %v1067_v32 }
  0xde   :  { %1026 = vmatmul.bf16.vlgmr.msrb.gmra.mxu2 %v2177_v24  ;;  %1039 = vmatmul.bf16.vlgmr.msra.gmra.mxu3 %v2175_v31  ;;  %v1926_v24 = vld [vmem:[#allocation9 + $0x18] sm:$0xff] }
  0xdf   :  { %v1934_v31 = vld [vmem:[#allocation9 + $0x58] sm:$0xff]  ;;  %1292 = vmatpush.bf16.msrb.mxu0 %v1926_v24  ;;  %1314 = vmatpush.bf16.msra.mxu2 %v1946_v49  ;;  %v1063_v24 = vpack.c.b16 %v1060_v42, %v1060_v42 }
  0xe0   :  { %1305 = vmatpush.bf16.msra.mxu1 %v1934_v31 }
  0xe3   :  { %1293 = vmatpush.bf16.msrb.mxu0 %v1925_v52  ;;  %1315 = vmatpush.bf16.msra.mxu2 %v1945_v54 }
  0xe4   :  { %1306 = vmatpush.bf16.msra.mxu1 %v1933_v53 }
  0xe7   :  { %1294 = vmatpush.bf16.msrb.mxu0 %v1924_v55  ;;  %1316 = vmatpush.bf16.msra.mxu2 %v1944_v57 }
  0xe8   :  { %1307 = vmatpush.bf16.msra.mxu1 %v1932_v56 }
  0xeb   :  { %1295 = vmatpush.bf16.msrb.mxu0 %v1923_v63  ;;  %1317 = vmatpush.bf16.msra.mxu2 %v1943_v1 }
  0xec   :  { %1308 = vmatpush.bf16.msra.mxu1 %v1931_v0 }
  0xef   :  { %1318 = vmatpush.bf16.msra.mxu2 %v1942_v6 }
  0xf3   :  { %1319 = vmatpush.bf16.msra.mxu2 %v1941_v10 }
  0xf7   :  { %1320 = vmatpush.bf16.msra.mxu2 %v1940_v15 }
  0xfb   :  { %1321 = vmatpush.bf16.msra.mxu2 %v1939_v20 }
 0x129   :  { %v897_v45 = vpop.f32.mrf.mxu0  ;;  %v910_v46 = vpop.f32.mrf.mxu1 }
 0x12a   :  { %v911_v21 = vadd.f32 %v910_v46, %v897_v45 }
 0x131   :  { %v899_v50 = vpop.f32.mrf.mxu0  ;;  %v912_v51 = vpop.f32.mrf.mxu1 }
 0x132   :  { %v1073_v50 = vpack.i.b16 %v1063_v24, %v1063_v24 }
 0x134   :  { %v1075_v55 = vperm.slane %v1073_v50, 0 }
 0x136   :  { %v1081_v60 = vunpack.c.l.bf16 %v1075_v55 }
 0x13a   :  { %v949_v61 = vpop.f32.mrf.mxu0  ;;  %v962_v62 = vpop.f32.mrf.mxu1 }
 0x13b   :  { %v963_v25 = vadd.f32 %v962_v62, %v949_v61 }
 0x13f   :  { %v923_v4 = vpop.f32.mrf.mxu2  ;;  %v936_v5 = vpop.f32.mrf.mxu3 }
 0x140   :  { %v924_v26 = vadd.f32 %v923_v4, %v911_v21 }
 0x142   :  { %v951_v8 = vpop.f32.mrf.mxu0  ;;  %v964_v9 = vpop.f32.mrf.mxu1  ;;  %v937_v34 = vadd.f32 %v936_v5, %v924_v26 }
 0x143   :  { %v1956_v8 = vld [vmem:[%s2204_s6] ss:$0 sm:$0xff] }
 0x147   :  { %v925_v13 = vpop.f32.mrf.mxu2  ;;  %v938_v14 = vpop.f32.mrf.mxu3 }
 0x14a   :  { %v1001_v18 = vpop.f32.mrf.mxu0  ;;  %v1014_v19 = vpop.f32.mrf.mxu1 }
 0x14b   :  { %v1015_v51 = vadd.f32 %v1014_v19, %v1001_v18 }
 0x14f   :  { %v975_v28 = vpop.f32.mrf.mxu2  ;;  %v988_v29 = vpop.f32.mrf.mxu3 }
 0x150   :  { %v976_v30 = vadd.f32 %v975_v28, %v963_v25 }
 0x152   :  { %v989_v35 = vadd.f32 %v988_v29, %v976_v30  ;;  %v1003_v36 = vpop.f32.mrf.mxu0  ;;  %v1016_v37 = vpop.f32.mrf.mxu1 }
 0x154   :  { %v1044_v58 = vpack.c.bf16 %v989_v35, %v937_v34 }
 0x156   :  { %v1076_v40 = vunpack.c.l.bf16 %v1044_v58  ;;  %v1077_v41 = vunpack.c.h.bf16 %v1044_v58 }
 0x157   :  { %v977_v43 = vpop.f32.mrf.mxu2  ;;  %v990_v44 = vpop.f32.mrf.mxu3 }
 0x158   :  { %v1082_v45 = vadd.f32 %v1079_v59, %v1076_v40  ;;  %v1083_v46 = vadd.f32 %v1080_v39, %v1077_v41 }
 0x15a   :  { %v1090_v47 = vmax.f32 %v1082_v45, 0.0  ;;  %v1091_v48 = vmax.f32 %v1083_v46, 0.0 }
 0x15c   :  { %v1093_v31 = vpack.c.bf16 %v1090_v47, %v1090_v47  ;;  %v1094_v49 = vpack.c.bf16 %v1091_v48, %v1091_v48 }
 0x15e   :  { %1296 = vmatmul.bf16.vlgmr.msrb.gmra.mxu0 %v1093_v31  ;;  %1309 = vmatmul.bf16.vlgmr.msra.gmra.mxu1 %v1094_v49 }
 0x161   :  { %v1027_v52 = vpop.f32.mrf.mxu2  ;;  %v1040_v53 = vpop.f32.mrf.mxu3 }
 0x162   :  { %v1028_v54 = vadd.f32 %v1027_v52, %v1015_v51 }
 0x164   :  { %v1041_v56 = vadd.f32 %v1040_v53, %v1028_v54 }
 0x166   :  { %v1045_v57 = vpack.c.bf16 %v1041_v56, %v1041_v56 }
 0x168   :  { %v1078_v61 = vunpack.c.l.bf16 %v1045_v57 }
 0x169   :  { %v1029_v62 = vpop.f32.mrf.mxu2  ;;  %v1042_v63 = vpop.f32.mrf.mxu3 }
 0x16a   :  { %v1084_v0 = vadd.f32 %v1081_v60, %v1078_v61 }
 0x16c   :  { %v1092_v1 = vmax.f32 %v1084_v0, 0.0 }
 0x16e   :  { %v1095_v2 = vpack.c.bf16 %v1092_v1, %v1092_v1 }
 0x170   :  { %1322 = vmatmul.bf16.vlgmr.msra.gmra.mxu2 %v1095_v2 }
 0x1db   :  { %v1297_v3 = vpop.f32.mrf.mxu0  ;;  %v1310_v4 = vpop.f32.mrf.mxu1 }
 0x1dc   :  { %v1311_v7 = vadd.f32 %v1310_v4, %v1297_v3 }
 0x1e3   :  { %v1299_v5 = vpop.f32.mrf.mxu0  ;;  %v1312_v6 = vpop.f32.mrf.mxu1 }
 0x1f3   :  { %v1323_v9 = vpop.f32.mrf.mxu2 }
 0x1f4   :  { %v1324_v10 = vadd.f32 %v1323_v9, %v1311_v7 }
 0x1f6   :  { %v1331_v11 = vadd.f32 %v1956_v8, %v1324_v10 }
 0x1f8   :  { %1957 = vtanh.f32 %v1331_v11 }
 0x1fb   :  { %v1325_v12 = vpop.f32.mrf.mxu2 }
 0x1fe   :  { %v1958_v13 = vpop.eup %1957 }
 0x1ff   :  { %v1333_v14 = vmul.f32 2.0, %v1958_v13 }
 0x201   :  { %1335 = vst.msk [vmem:[%s2205_s7] sm:$0xff] %vm1334_vm2, %v1333_v14 }
 0x202   :  { %1340 = vsyncpa [#allocation3], 1 }
 0x203   :  { %1341 = vsyncpa [#allocation5], 1 }
 0x204   :  { %1342 = vsyncpa [#allocation8], 1 }

</bundles_post_ra>
